<compile_context>
chip_gen: v7x
topology: tpu7x:2x2x1
jax: 0.10.0
libtpu: 0.0.40
codegen_flags: <defaults>
</compile_context>

<pallas_src>
import functools

import jax
import jax.numpy as jnp
from jax import lax
from jax.experimental import pallas as pl
from jax.experimental.pallas import tpu as pltpu


def _conv_kernel(p_ref, w_ref, b_ref, m_ref, o_ref, *, relu):
    # p_ref : (1, K*K*Cin, H*W)   im2col patches for one batch element
    # w_ref : (Cout, K*K*Cin)     flattened conv weights
    # b_ref : (Cout, 1)           bias
    # m_ref : (1, 1, H*W)         spatial mask (broadcast over channels)
    # o_ref : (1, Cout, H*W)      output block (lane-dense, unmasked stores)
    acc = jnp.dot(w_ref[...], p_ref[0],
                  preferred_element_type=jnp.float32)    # (Cout, H*W)
    acc = acc + b_ref[...]                               # (Cout, 1) bcast over lanes
    out = acc * m_ref[0]                                 # (1, H*W) bcast over sublanes
    if relu:
        out = jnp.maximum(out, 0.0)
    o_ref[0] = out.astype(o_ref.dtype)


def convolve_forward(x_nchw, mask_nchw, weight_oihw, bias, *, kernel_size, relu=True):
    """Pallas forward pass matching Convolve.forward(x, mask). NCHW in, NCHW out."""
    assert kernel_size in (1, 3)
    N, Cin, H, W = x_nchw.shape
    Cout = weight_oihw.shape[0]
    K = kernel_size
    pad = 1 if K == 3 else 0
    HW = H * W
    KKC = K * K * Cin

    # ---- layout plumbing in the wrapper (no arithmetic) --------------------
    x_pad = jnp.pad(x_nchw, ((0, 0), (0, 0), (pad, pad), (pad, pad)))
    # im2col: patches[n, c*K*K + ky*K + kx, h*W + w] = x_pad[n, c, h+ky, w+kx]
    taps = [x_pad[:, :, ky:ky + H, kx:kx + W]
            for ky in range(K) for kx in range(K)]            # each (N, Cin, H, W)
    patches = jnp.stack(taps, axis=2).reshape(N, KKC, HW)     # (N, K*K*Cin, H*W)

    # weight (Cout, Cin, K, K) -> (Cout, Cin*K*K): (c, ky, kx) order matches patches
    w_flat = weight_oihw.reshape(Cout, KKC)
    b_2d = bias.reshape(Cout, 1)
    m_flat = mask_nchw.reshape(N, 1, HW)

    kernel = functools.partial(_conv_kernel, relu=relu)

    out_flat = pl.pallas_call(
        kernel,
        out_shape=jax.ShapeDtypeStruct((N, Cout, HW), x_nchw.dtype),
        grid_spec=pltpu.PrefetchScalarGridSpec(
            num_scalar_prefetch=0,
            grid=(N,),
            in_specs=[
                pl.BlockSpec((1, KKC, HW), lambda n: (n, 0, 0)),
                pl.BlockSpec((Cout, KKC), lambda n: (0, 0)),
                pl.BlockSpec((Cout, 1), lambda n: (0, 0)),
                pl.BlockSpec((1, 1, HW), lambda n: (n, 0, 0)),
            ],
            out_specs=pl.BlockSpec((1, Cout, HW), lambda n: (n, 0, 0)),
        ),
        compiler_params=pltpu.CompilerParams(
            dimension_semantics=("parallel",)),
    )(patches, w_flat, b_2d, m_flat)

    # (N, Cout, H*W) -> (N, Cout, H, W): contiguous reshape, free.
    return out_flat.reshape(N, Cout, H, W)


def _reference_forward(x_nchw, mask_nchw, weight_oihw, bias, *, kernel_size, relu=True):
    pad = 1 if kernel_size == 3 else 0
    y = lax.conv_general_dilated(
        x_nchw, weight_oihw, window_strides=(1, 1),
        padding=((pad, pad), (pad, pad)),
        dimension_numbers=("NCHW", "OIHW", "NCHW"))
    y = y + bias.reshape(1, -1, 1, 1)
    y = y * mask_nchw
    return jnp.maximum(y, 0.0) if relu else y


if __name__ == "__main__":
    # Small shapes consistent with the module: batch=2, in_ch=4, out_ch=8, 16x16 board.
    N, Cin, Cout, H, W = 2, 4, 8, 16, 16
    K = 3
    relu = True

    key = jax.random.PRNGKey(0)
    kx, kw, km = jax.random.split(key, 3)

    x = jax.random.normal(kx, (N, Cin, H, W), dtype=jnp.float32)

    # Deterministic parameter init mirroring __init_weights():
    #   xavier_normal_(weight, gain=1.0): std = sqrt(2 / (fan_in + fan_out))
    #   fan_in = Cin*K*K, fan_out = Cout*K*K ; bias = zeros.
    fan_in = Cin * K * K
    fan_out = Cout * K * K
    std = (2.0 / (fan_in + fan_out)) ** 0.5
    weight = jax.random.normal(kw, (Cout, Cin, K, K), dtype=jnp.float32) * std
    bias = jnp.zeros((Cout,), dtype=jnp.float32)

    # Binary spatial mask broadcast over channels, as in `conv(x) * mask`.
    mask = (jax.random.uniform(km, (N, 1, H, W)) > 0.2).astype(jnp.float32)

    y = convolve_forward(x, mask, weight, bias, kernel_size=K, relu=relu)
    y = jax.block_until_ready(y)

    y_ref = _reference_forward(x, mask, weight, bias, kernel_size=K, relu=relu)
    assert y.shape == (N, Cout, H, W)
    assert jnp.allclose(y, y_ref, atol=1e-5, rtol=1e-5)

    print("KERNEL_OK")
</pallas_src>

<mosaic_0001>
module attributes {stable_mosaic.version = 11 : i64} {
  func.func @_conv_kernel(%arg0: i32, %arg1: memref<1x36x256xf32, #tpu.memory_space<vmem>>, %arg2: memref<8x36xf32, #tpu.memory_space<vmem>>, %arg3: memref<8x1xf32, #tpu.memory_space<vmem>>, %arg4: memref<1x1x256xf32, #tpu.memory_space<vmem>>, %arg5: memref<1x8x256xf32, #tpu.memory_space<vmem>>) attributes {dimension_semantics = [#tpu.dimension_semantics<parallel>], iteration_bounds = array<i64: 2>, scalar_prefetch = 0 : i64, scratch_operands = 0 : i64, tpu.core_type = #tpu.core_type<tc>, window_params = [{transform_indices = @transform_0, window_bounds = array<i64: 1, 36, 256>}, {pipeline_mode = #tpu.pipeline_mode<synchronous>, transform_indices = @transform_1, window_bounds = array<i64: 8, 36>}, {pipeline_mode = #tpu.pipeline_mode<synchronous>, transform_indices = @transform_2, window_bounds = array<i64: 8, 1>}, {transform_indices = @transform_3, window_bounds = array<i64: 1, 1, 256>}, {transform_indices = @transform_4, window_bounds = array<i64: 1, 8, 256>}]} {
    %c0 = arith.constant 0 : index
    %c0_0 = arith.constant 0 : index
    %0 = vector.load %arg2[%c0, %c0_0] : memref<8x36xf32, #tpu.memory_space<vmem>>, vector<8x36xf32>
    %c0_1 = arith.constant 0 : index
    %c0_2 = arith.constant 0 : index
    %c0_3 = arith.constant 0 : index
    %1 = vector.load %arg1[%c0_1, %c0_2, %c0_3] : memref<1x36x256xf32, #tpu.memory_space<vmem>>, vector<1x36x256xf32>
    %2 = vector.shape_cast %1 : vector<1x36x256xf32> to vector<36x256xf32>
    %cst = arith.constant dense<0.000000e+00> : vector<8x256xf32>
    %3 = tpu.matmul %0, %2, %cst {dimension_numbers = #tpu.dot_dimension_numbers<[1], [0], [0], [1], [0, 0, 1, 1], [], []>} : vector<8x36xf32>, vector<36x256xf32>, vector<8x256xf32> -> vector<8x256xf32>
    %c0_4 = arith.constant 0 : index
    %c0_5 = arith.constant 0 : index
    %4 = vector.load %arg3[%c0_4, %c0_5] : memref<8x1xf32, #tpu.memory_space<vmem>>, vector<8x1xf32>
    %5 = vector.broadcast %4 : vector<8x1xf32> to vector<8x256xf32>
    %6 = arith.addf %3, %5 : vector<8x256xf32>
    %c0_6 = arith.constant 0 : index
    %c0_7 = arith.constant 0 : index
    %c0_8 = arith.constant 0 : index
    %7 = vector.load %arg4[%c0_6, %c0_7, %c0_8] : memref<1x1x256xf32, #tpu.memory_space<vmem>>, vector<1x1x256xf32>
    %8 = vector.shape_cast %7 : vector<1x1x256xf32> to vector<1x256xf32>
    %9 = vector.broadcast %8 : vector<1x256xf32> to vector<8x256xf32>
    %10 = arith.mulf %6, %9 : vector<8x256xf32>
    %cst_9 = arith.constant 0.000000e+00 : f32
    %11 = vector.broadcast %cst_9 : f32 to vector<8x256xf32>
    %12 = arith.maximumf %10, %11 : vector<8x256xf32>
    %c0_10 = arith.constant 0 : index
    %c0_11 = arith.constant 0 : index
    %c0_12 = arith.constant 0 : index
    %13 = vector.load %arg5[%c0_10, %c0_11, %c0_12] : memref<1x8x256xf32, #tpu.memory_space<vmem>>, vector<1x8x256xf32>
    %14 = vector.shape_cast %13 : vector<1x8x256xf32> to vector<8x256xf32>
    %15 = vector.shape_cast %12 : vector<8x256xf32> to vector<1x8x256xf32>
    tpu.vector_store %arg5[%c0_10, %c0_11, %c0_12], %15 {strides = array<i32>} : memref<1x8x256xf32, #tpu.memory_space<vmem>>, vector<1x8x256xf32>,
    return
  }
  func.func @transform_0(%arg0: i32) -> (i32, i32, i32) {
    %c0_i32 = arith.constant 0 : i32
    %c0_i32_0 = arith.constant 0 : i32
    %c0_i32_1 = arith.constant 0 : i32
    return %arg0, %c0_i32, %c0_i32_0 : i32, i32, i32
  }
  func.func @transform_1(%arg0: i32) -> (i32, i32) {
    %c0_i32 = arith.constant 0 : i32
    %c0_i32_0 = arith.constant 0 : i32
    %c0_i32_1 = arith.constant 0 : i32
    return %c0_i32, %c0_i32_0 : i32, i32
  }
  func.func @transform_2(%arg0: i32) -> (i32, i32) {
    %c0_i32 = arith.constant 0 : i32
    %c0_i32_0 = arith.constant 0 : i32
    %c0_i32_1 = arith.constant 0 : i32
    return %c0_i32, %c0_i32_0 : i32, i32
  }
  func.func @transform_3(%arg0: i32) -> (i32, i32, i32) {
    %c0_i32 = arith.constant 0 : i32
    %c0_i32_0 = arith.constant 0 : i32
    %c0_i32_1 = arith.constant 0 : i32
    return %arg0, %c0_i32, %c0_i32_0 : i32, i32, i32
  }
  func.func @transform_4(%arg0: i32) -> (i32, i32, i32) {
    %c0_i32 = arith.constant 0 : i32
    %c0_i32_0 = arith.constant 0 : i32
    %c0_i32_1 = arith.constant 0 : i32
    return %arg0, %c0_i32, %c0_i32_0 : i32, i32, i32
  }
}

</mosaic_0001>

<bundles_post_ra>
// kernel: tpu_custom_call.1
= control target key start
LH: loop header
LB: loop body
LE: loop exit
PB: predicated region body
PF: predicated region fallthrough
CT: control target
= control target key end

     0   :  { %9 = vsyncpa [#allocation3], 0  ;;  %s688_s0 = inlined_call_operand.vmem [shape: f32[2,36,256], index: 0, kind: input, shape index: {}]   ;;  %s689_s1 = inlined_call_operand.vmem [shape: f32[8,36], index: 1, kind: input, shape index: {}]   ;;  %s690_s2 = inlined_call_operand.vmem [shape: f32[8,1], index: 2, kind: input, shape index: {}]   ;;  %s691_s3 = inlined_call_operand.vmem [shape: f32[2,1,256], index: 3, kind: input, shape index: {}]   ;;  %s692_s4 = inlined_call_operand.hbm [shape: f32[2,8,256], index: 4, kind: output, shape index: {}]  }
   0x1   :  { %11 = vsyncpa [#allocation3 + $0x1], 0  ;;  %s575_s15 = smov 0   ;;  %s577_s16 = smov 0  }
   0x2   :  { %s579_s17 = smov 0   ;;  %s581_s18 = smov 0  }
   0x3 LB: > { %s596_s19 = sadd.s32 4294967295, %s545_s18   ;;  %s416_s20 = sadd.s32 4294967294, %s545_s18   ;;  %s545_s18 = sphi %s581_s18, %s698_s18   ;;  %s541_s17 = sphi %s579_s17, %s697_s17   ;;  %s537_s16 = sphi %s577_s16, %s696_s16   ;;  %s533_s15 = sphi %s575_s15, %s695_s15  }
   0x4   : > { %s600_s21 = sadd.s32 1, %s545_s18   ;;  %s118_s22 = sadd.s32 1, %s541_s17 }
   0x5   : > { %s115_s23 = ssub.s32 %s545_s18, %s600_s21  ;;  %p128_p0 = scmp.ne.s32.totalorder %s541_s17, %s537_s16 }
   0x6   : > { %p116_p1 = scmp.eq.s32.totalorder %s115_s23, 0  ;;  %p129_p2 = scmp.eq.s32.totalorder %s596_s19, 1 }
   0x7   : > { %p134_p3 = scmp.ne.s32.totalorder %s537_s16, %s533_s15  ;;  %p135_p4 = scmp.eq.s32.totalorder %s416_s20, 1 }
   0x8   : > { %s611_s24 = scalar_select %p116_p1, %s541_s17, %s118_s22  }
   0x9   : > { %p613_p5 = por %p129_p2, %p128_p0  ;;  %p617_p6 = por %p135_p4, %p134_p3 }
   0xa   : > { %p419_p7 = scmp.ge.s32.totalorder %s545_s18, 1  ;;  %p174_p8 = scmp.lt.s32.totalorder %s545_s18, 3 }
   0xc   : > { %p175_p9 = pnand %p419_p7, %p174_p8 }
   0xd   : > { %p204_p10 = scmp.lt.s32.totalorder (!%p175_p9), %s596_s19, 1  ;;  %v547_v0 = vmov (!%p175_p9), 0.0   ;;  %v548_v1 = vmov (!%p175_p9), 0   ;;  %v224_v2 = vld [vmem:[%s690_s2] sm:$0xff] (!%p175_p9)  ;;  %vm234_vm0 = vcmask (!%p175_p9), 1043456   ;;  %vm230_vm1 = vcmask (!%p175_p9), 293888  }
   0xe   : > { %178 = sbr.rel (%p175_p9) target bundleno = 272 (0x110), region = 36  ;;  %305 = vmatprep.mubr.f32.mxu0 (!%p175_p9), %v547_v0  ;;  %482 = vset.pattern.permute.xlu0 (!%p175_p9), %v548_v1  ;;  %v213_v17 = vld [vmem:[%s689_s1] sm:$0xff] (!%p175_p9)  ;;  %v314_v18 = vlaneseq (!%p175_p9)  ;;  %s201_s14 = sand.u32 (!%p175_p9), 1, %s537_s16  }
   0xf   : > { %227 = vperm.xlu0 (!%p175_p9), %482, %v224_v2   ;;  %s420_s20 = sshll.u32 (!%p175_p9), %s201_s14, 4  ;;  %s431_s22 = sshll.u32 (!%p175_p9), %s596_s19, 8 }
  0x10   : > { %v315_v19 = vshrl.u32 (!%p175_p9), %v314_v18, 7  ;;  %s203_s23 = scalar_lea.vmem (!%p175_p9), [#allocation2], %s420_s20  ;;  %s331_s5 = scalar_lea.sflag (!%p175_p9), [#allocation3], %s201_s14 }
  0x11   : > { %s345_s27 = sshll.u32 (!%p175_p9), %s203_s23, 4  ;;  %s648_s27 = int_to_ptr.vmem [resolvable:$true] %s345_s27 }
  0x12   : > { %v316_v20 = vsub.s32 (!%p175_p9), 0, %v315_v19  ;;  %v320_v22 = vsub.s32 (!%p175_p9), 1, %v315_v19  ;;  %s483_s6 = scalar_lea.vmem (!%p175_p9), %s648_s27, 256 }
  0x13   : > { %p484_p11 = scmp.ne.s32.totalorder (!%p175_p9), %s648_s27, %s483_s6 }
  0x15   : > { %s628_s29 = scalar_select %p204_p10, %s596_s19, 1 }
  0x16   : > { %p485_p12 = pnand %p484_p11, %p613_p5  ;;  %s549_s19 = smov [#allocation2]  }
  0x17   : > { %s440_s30 = smul.u32 80, %s628_s29  ;;  %s422_s10 = sshll.u32 %s628_s29, 1 }
  0x18   : > { %s212_s13 = scalar_lea.vmem %s691_s3, %s422_s10  ;;  %p486_p13 = pneg %p485_p12 }
  0x19   : > { %s208_s7 = scalar_lea.vmem %s688_s0, %s440_s30  ;;  %v312_v21 = vld [vmem:[%s212_s13] sm:$0x3]  ;;  %s646_s30 = scalar_lea.hbm %s692_s4, %s431_s22 }
  0x1a   : > { %v215_v3 = vld [vmem:[%s208_s7 + $0x8] sm:$0xff]  ;;  %v217_v4 = vld [vmem:[%s208_s7 + $0x18] sm:$0xff]  ;;  %v214_v5 = vld [vmem:[%s208_s7] sm:$0xff]  ;;  %v317_v24 = vrot.slane %v312_v21, %v316_v20  ;;  %v321_v26 = vrot.slane %v312_v21, %v320_v22 }
  0x1b   : > { %v432_v6 = vpack.c.bf16 %v217_v4, %v215_v3  ;;  %v216_v7 = vld [vmem:[%s208_s7 + $0x10] sm:$0xff]  ;;  %v219_v8 = vld [vmem:[%s208_s7 + $0x28] sm:$0xff]  ;;  %v221_v9 = vld [vmem:[%s208_s7 + $0x38] sm:$0xff] }
  0x1c   : > { %v434_v10 = vpack.c.bf16 %v216_v7, %v214_v5  ;;  %v436_v11 = vpack.c.bf16 %v221_v9, %v219_v8  ;;  %v218_v12 = vld [vmem:[%s208_s7 + $0x20] sm:$0xff]  ;;  %v220_v13 = vld [vmem:[%s208_s7 + $0x30] sm:$0xff]  ;;  %v223_v15 = vld [vmem:[%s208_s7 + $0x48] sm:$0xf] }
  0x1d   : > { %433 = vmatprep.subr.bf16.mxu0 %v432_v6  ;;  %v438_v14 = vpack.c.bf16 %v220_v13, %v218_v12  ;;  %v222_v16 = vld [vmem:[%s208_s7 + $0x40] sm:$0xf]  ;;  %s487_s7 = sshll.u32 %s549_s19, 4  ;;  %s488_s7 = int_to_ptr.vmem [resolvable:$false] %s487_s7 }
  0x1e   : > { %435 = vmatpush1.bf16.msra.mxu0 %v434_v10  ;;  %s489_s8 = scalar_lea.vmem %s488_s7, 512  ;;  %p490_p0 = scmp.lt.s32.totalorder %s648_s27, %s488_s7 }
  0x1f   : > { %437 = vmatprep.subr.bf16.mxu0 %v436_v11  ;;  %p491_p1 = scmp.lt.s32.totalorder %s489_s8, %s483_s6 }
  0x21   : > { %p492_p2 = por %p491_p1, %p490_p0 }
  0x22   : > { %439 = vmatpush1.bf16.msra.mxu0 %v438_v14 }
  0x23   : > { %423 = vmatprep.subr.msk.mxu0 %vm234_vm0, %v223_v15  ;;  %p493_p3 = pnand %p492_p2, %p486_p13 }
  0x26   : > { %424 = vmatpush1.msk.msra.mxu0 %vm234_vm0, %v222_v16 }
  0x27   : > { %425 = vmatmul.mubr.msk.f32.vlgmr.msra.gmra.mrb[0].mxu0 %vm230_vm1, %v213_v17 }
  0x8e   : > { %v228_v23 = vpop.permute.xlu0 %227 }
  0xfa   : > { %v307_v25 = vpop.f32.mrb[0].mxu0 }
  0xfb   : > { %v308_v27 = vadd.f32 %v307_v25, %v228_v23  ;;  %v309_v28 = vpop.f32.mrb[1].mxu0 }
  0xfc   : > { %v310_v29 = vadd.f32 %v309_v28, %v228_v23 }
  0xfd   : > { %v324_v30 = vmul.f32 %v317_v24, %v308_v27 }
  0xfe   : > { %v325_v31 = vmul.f32 %v321_v26, %v310_v29 }
  0xff   : > { %v326_v32 = vmax.f32 %v324_v30, 0.0 }
 0x100   : > { %v327_v33 = vmax.f32 %v325_v31, 0.0 }
 0x101   : > { %328 = vst [vmem:[%s203_s23] sm:$0xff] %v326_v32 }
 0x102   : > { %329 = vst [vmem:[%s203_s23 + $0x8] sm:$0xff] %v327_v33 }
 0x103   : > { %496 = shalt.err (!%p493_p3)
}
 0x104   : > { %s497_s9 = scalar_lea.hbm %s646_s30, 256  ;;  %s501_s12 = scalar_lea.hbm %s692_s4, 512 }
 0x105   : > { %p498_p4 = scmp.ne.s32.totalorder %s646_s30, %s497_s9  ;;  %p502_p9 = scmp.lt.u32.totalorder %s646_s30, %s692_s4 }
 0x106   : > { %p503_p10 = scmp.lt.u32.totalorder %s501_s12, %s497_s9  ;;  %p505_p12 = scmp.lt.u32.totalorder %s497_s9, %s646_s30 }
 0x107   : > { %p499_p7 = pnand %p498_p4, %p613_p5 }
 0x108   : > { %p504_p11 = por %p503_p10, %p502_p9 }
 0x109   : > { %p500_p8 = pneg %p499_p7 }
 0x10a   : > { %p506_p13 = por %p505_p12, %p504_p11 }
 0x10c   : > { %p507_p0 = pnand %p506_p13, %p500_p8 }
 0x10e   : > { %510 = shalt.err (!%p507_p0)
}
 0x10f   : > { %441 = dma.vmem_to_hbm [thread:$0]  (%p613_p5), %s648_s27, 256, %s646_s30, %s331_s5  }
 0x110 PF: > { %p447_p1 = scmp.ge.s32.totalorder %s545_s18, 2  ;;  %s357_s20 = sand.u32 1, %s533_s15  }
 0x111   : > { %s358_s22 = scalar_lea.sflag [#allocation3], %s357_s20 }
 0x112   : > { %p444_p2 = pnand %p447_p1, %p617_p6 }
 0x114   : > { %528 = dma.done.wait (!%p444_p2), %s358_s22, 256  }
 0x115   : > { %530 = vsyncadd (!%p444_p2), %s358_s22, 4294967040  ;;  %p14_p3 = scmp.ge.s32.totalorder %s600_s21, 4   ;;  %s695_s15 = smov %s537_s16 }
 0x116   : > { %s696_s16 = smov %s541_s17  ;;  %s697_s17 = smov %s611_s24 }
 0x117   : > { %s698_s18 = smov %s600_s21  ;;  %16 = sbr.rel (!%p14_p3) target bundleno = 3 (0x3), region = 74 }
 0x11e   :  { %363 = vsyncpa [#allocation3], 1 }
 0x11f   :  { %365 = vsyncpa [#allocation3 + $0x1], 1 }

</bundles_post_ra>
